<compile_context>
chip_gen: v7x
topology: tpu7x:2x2x1
jax: 0.10.0
libtpu: 0.0.40
codegen_flags: <defaults>
</compile_context>

<pallas_src>
import math
import functools

import jax
import jax.numpy as jnp
from jax.experimental import pallas as pl
from jax.experimental.pallas import tpu as pltpu


def _ff_kernel(x_ref, w_ref, o_ref, *, cos_only: bool):
    # x_ref: (TM, IN), w_ref: (IN, OUT) already scaled by 2*pi,
    # o_ref: (TM, OUT) if cos_only else (TM, 2*OUT)
    z = jnp.dot(x_ref[...], w_ref[...], preferred_element_type=jnp.float32)
    if cos_only:
        o_ref[...] = jnp.cos(z).astype(o_ref.dtype)
    else:
        # One full-width store instead of two masked half-block writes.
        o_ref[...] = jnp.concatenate(
            [jnp.sin(z), jnp.cos(z)], axis=-1
        ).astype(o_ref.dtype)


def _round_up(x: int, m: int) -> int:
    return (x + m - 1) // m * m


def fourier_feature(x, feature_map, cos_only: bool = False, *, tile_m: int = 512):
    """x: (..., infeature), feature_map: (outfeature, infeature) (nn.Linear layout)."""
    out_features, in_features = feature_map.shape
    lead_shape = x.shape[:-1]
    x2d = x.reshape(-1, in_features)
    n = x2d.shape[0]
    out_cols = out_features if cos_only else 2 * out_features

    # Hoist the transpose and the 2*pi scale out of the kernel (done once here,
    # instead of once per grid step inside the kernel).
    w = (2.0 * math.pi) * feature_map.T.astype(jnp.float32)  # (IN, OUT)

    # Row-tile selection: multiple of 8, no larger than N (rounded up), and
    # sized so double-buffered x/out tiles + weight stay well under the
    # smallest scoped-VMEM default across generations (v7x: 32 MiB scoped).
    vmem_budget = 24 * 1024 * 1024

    def _vmem_bytes(t):
        # 2x double-buffered x tile + 2x double-buffered out tile + weight (x2)
        return (2 * t * (in_features + out_cols)
                + 2 * out_features * in_features) * 4

    tm = max(8, _round_up(min(tile_m, n), 8))
    while tm > 8 and _vmem_bytes(tm) > vmem_budget:
        tm -= 8

    n_pad = _round_up(n, tm)
    if n_pad != n:
        x2d = jnp.pad(x2d, ((0, n_pad - n), (0, 0)))

    grid = (n_pad // tm,)
    kernel = functools.partial(_ff_kernel, cos_only=cos_only)

    itemsize = jnp.dtype(x.dtype).itemsize
    cost = pl.CostEstimate(
        flops=2 * n_pad * in_features * out_features,
        transcendentals=n_pad * out_cols,
        bytes_accessed=(n_pad * in_features * itemsize
                        + n_pad * out_cols * itemsize
                        + out_features * in_features * 4),
    )

    out = pl.pallas_call(
        kernel,
        out_shape=jax.ShapeDtypeStruct((n_pad, out_cols), x.dtype),
        grid_spec=pltpu.PrefetchScalarGridSpec(
            num_scalar_prefetch=0,
            grid=grid,
            in_specs=[
                pl.BlockSpec((tm, in_features), lambda i: (i, 0)),
                pl.BlockSpec((in_features, out_features), lambda i: (0, 0)),
            ],
            out_specs=pl.BlockSpec((tm, out_cols), lambda i: (i, 0)),
        ),
        compiler_params=pltpu.CompilerParams(
            dimension_semantics=("parallel",),
            vmem_limit_bytes=min(_vmem_bytes(tm) + (8 << 20), 32 << 20),
        ),
        cost_estimate=cost,
    )(x2d, w)

    if n_pad != n:
        out = out[:n]
    return out.reshape(*lead_shape, out_cols)


if __name__ == "__main__":
    key = jax.random.PRNGKey(0)
    k_w, k_x = jax.random.split(key)

    sigma = 1.0
    in_features = 8
    out_features = 32
    batch, seq = 2, 8  # -> N = 16 rows

    # Deterministic "parameter": feature_map ~ Normal(0, sigma), shape (out, in).
    feature_map = sigma * jax.random.normal(
        k_w, (out_features, in_features), dtype=jnp.float32
    )
    x = jax.random.normal(k_x, (batch, seq, in_features), dtype=jnp.float32)

    # Pallas kernel (both variants).
    out = jax.block_until_ready(fourier_feature(x, feature_map, cos_only=False))
    out_cos = jax.block_until_ready(fourier_feature(x, feature_map, cos_only=True))

    # Pure-JAX reference.
    z_ref = 2.0 * math.pi * jnp.einsum("bsi,oi->bso", x, feature_map)
    ref = jnp.concatenate([jnp.sin(z_ref), jnp.cos(z_ref)], axis=-1)
    ref_cos = jnp.cos(z_ref)

    assert out.shape == (batch, seq, 2 * out_features)
    assert out_cos.shape == (batch, seq, out_features)
    assert jnp.allclose(out, ref, atol=1e-5, rtol=1e-5)
    assert jnp.allclose(out_cos, ref_cos, atol=1e-5, rtol=1e-5)

    # Also exercise a ragged / larger N path (N not a multiple of the tile).
    x_big = jax.random.normal(key, (3, 137, in_features), dtype=jnp.float32)
    out_big = jax.block_until_ready(fourier_feature(x_big, feature_map))
    z_big = 2.0 * math.pi * jnp.einsum("bsi,oi->bso", x_big, feature_map)
    ref_big = jnp.concatenate([jnp.sin(z_big), jnp.cos(z_big)], axis=-1)
    assert out_big.shape == (3, 137, 2 * out_features)
    assert jnp.allclose(out_big, ref_big, atol=1e-5, rtol=1e-5)

    print("KERNEL_OK")
</pallas_src>

<mosaic_0001>
module attributes {stable_mosaic.version = 11 : i64} {
  func.func @_ff_kernel(%arg0: i32, %arg1: memref<16x8xf32, #tpu.memory_space<vmem>>, %arg2: memref<8x32xf32, #tpu.memory_space<vmem>>, %arg3: memref<16x64xf32, #tpu.memory_space<vmem>>) attributes {dimension_semantics = [#tpu.dimension_semantics<parallel>], iteration_bounds = array<i64: 1>, scalar_prefetch = 0 : i64, scratch_operands = 0 : i64, tpu.core_type = #tpu.core_type<tc>, window_params = [{transform_indices = @transform_0, window_bounds = array<i64: 16, 8>}, {pipeline_mode = #tpu.pipeline_mode<synchronous>, transform_indices = @transform_1, window_bounds = array<i64: 8, 32>}, {transform_indices = @transform_2, window_bounds = array<i64: 16, 64>}]} {
    %c0 = arith.constant 0 : index
    %c0_0 = arith.constant 0 : index
    %0 = vector.load %arg1[%c0, %c0_0] : memref<16x8xf32, #tpu.memory_space<vmem>>, vector<16x8xf32>
    %c0_1 = arith.constant 0 : index
    %c0_2 = arith.constant 0 : index
    %1 = vector.load %arg2[%c0_1, %c0_2] : memref<8x32xf32, #tpu.memory_space<vmem>>, vector<8x32xf32>
    %cst = arith.constant dense<0.000000e+00> : vector<16x32xf32>
    %2 = tpu.matmul %0, %1, %cst {dimension_numbers = #tpu.dot_dimension_numbers<[1], [0], [0], [1], [0, 0, 1, 1], [], []>} : vector<16x8xf32>, vector<8x32xf32>, vector<16x32xf32> -> vector<16x32xf32>
    %3 = math.sin %2 : vector<16x32xf32>
    %4 = math.cos %2 : vector<16x32xf32>
    %5 = tpu.concatenate %3, %4 in 1 : vector<16x32xf32>, vector<16x32xf32> -> vector<16x64xf32>
    %c0_3 = arith.constant 0 : index
    %c0_4 = arith.constant 0 : index
    %6 = vector.load %arg3[%c0_3, %c0_4] : memref<16x64xf32, #tpu.memory_space<vmem>>, vector<16x64xf32>
    tpu.vector_store %arg3[%c0_3, %c0_4], %5 {strides = array<i32>} : memref<16x64xf32, #tpu.memory_space<vmem>>, vector<16x64xf32>,
    return
  }
  func.func @transform_0(%arg0: i32) -> (i32, i32) {
    %c0_i32 = arith.constant 0 : i32
    %c0_i32_0 = arith.constant 0 : i32
    return %arg0, %c0_i32 : i32, i32
  }
  func.func @transform_1(%arg0: i32) -> (i32, i32) {
    %c0_i32 = arith.constant 0 : i32
    %c0_i32_0 = arith.constant 0 : i32
    %c0_i32_1 = arith.constant 0 : i32
    return %c0_i32, %c0_i32_0 : i32, i32
  }
  func.func @transform_2(%arg0: i32) -> (i32, i32) {
    %c0_i32 = arith.constant 0 : i32
    %c0_i32_0 = arith.constant 0 : i32
    return %arg0, %c0_i32 : i32, i32
  }
}

</mosaic_0001>

<bundles_post_ra>
// kernel: tpu_custom_call.1
= control target key start
LH: loop header
LB: loop body
LE: loop exit
PB: predicated region body
PF: predicated region fallthrough
CT: control target
= control target key end

     0   :  { %vm15_vm0 = vcmask 64512   ;;  %s730_s0 = inlined_call_operand.vmem [shape: f32[16,8], index: 0, kind: input, shape index: {}]   ;;  %s731_s1 = inlined_call_operand.vmem [shape: f32[8,32], index: 1, kind: input, shape index: {}]   ;;  %s732_s2 = inlined_call_operand.hbm [shape: f32[16,64], index: 2, kind: output, shape index: {}]  }
   0x1   :  { %v14_v0 = vld [vmem:[%s731_s1] sm:$0xff]  ;;  %v13_v2 = vld [vmem:[%s730_s0 + $0x8] sm:$0xff] }
   0x2   :  { %v12_v1 = vld [vmem:[%s730_s0] sm:$0xff]  ;;  %562 = vmatprep.subr.mxu0 %v14_v0 }
   0x3   :  { %564 = vmatprep.mubr.msk.f32.mxu0 %vm15_vm0, %v12_v1 }
   0x4   :  { %7 = vsyncpa [#allocation3], 0  ;;  %563 = vmatpush3.msra.mxu0 %v14_v0  ;;  %v617_v25 = vmov 683565275   ;;  %v618_v29 = vmov 2475754826  }
   0x5   :  { %565 = vmatmul.mubr.msk.f32.vlgmr.msra.gmra.mrb[0].mxu0 %vm15_vm0, %v13_v2  ;;  %v619_v31 = vmov 2131351028   ;;  %v620_v33 = vmov 2102212464   ;;  %v621_v35 = vmov 920167782  }
   0x6   :  { %v622_v42 = vmov 1326507024   ;;  %s623_s0 = smov 32   ;;  %s624_s1 = smov [#allocation2]  }
   0x7   :  { %s530_s15 = sshll.u32 %s624_s1, 4  ;;  %s531_s15 = int_to_ptr.vmem [resolvable:$true] %s530_s15 }
   0x8   :  { %s593_s16 = scalar_lea.vmem %s531_s15, 256  ;;  %p598_p1 = scmp.lt.s32.totalorder %s531_s15, %s531_s15 }
   0x9   :  { %p594_p0 = scmp.ne.s32.totalorder %s531_s15, %s593_s16  ;;  %p599_p2 = scmp.lt.s32.totalorder %s593_s16, %s593_s16 }
   0xb   :  { %p600_p3 = por %p599_p2, %p598_p1 }
   0xd   :  { %p601_p4 = pnand %p600_p3, %p594_p0 }
  0xd8   :  { %v651_v3 = vpop.f32.mrb[0].mxu0 }
  0xd9   :  { %v201_v4 = vand.u32 2147483647, %v651_v3  ;;  %v204_v5 = vand.u32 2139095040, %v651_v3  ;;  %v655_v6 = vpop.f32.mrb[1].mxu0  ;;  %vm203_vm15 = vcmp.lt.s32.totalorder %v651_v3, 0 }
  0xda   :  { %v100_v7 = vand.u32 2139095040, %v655_v6  ;;  %v97_v10 = vand.u32 2147483647, %v655_v6 }
  0xdb   :  { %v205_v8 = vshrl.u32 %v204_v5, 23  ;;  %v208_v9 = vand.u32 8388607, %v201_v4  ;;  %vm202_vm0 = vcmp.le.f32.partialorder %v201_v4, 0.7853982 }
  0xdc   :  { %v101_v11 = vshrl.u32 %v100_v7, 23  ;;  %v663_v16 = vand.u32 8388607, %v97_v10 }
  0xdd   :  { %v547_v12 = vadd.s32 4294967169, %v205_v8  ;;  %v209_v15 = vor.u32 8388608, %v208_v9 }
  0xde   :  { %v543_v13 = vadd.s32 4294967169, %v101_v11  ;;  %v105_v23 = vor.u32 8388608, %v663_v16 }
  0xdf   :  { %v211_v14 = vadd.s32 1, %v547_v12  ;;  %v665_v22 = vshll.u32 %v209_v15, 8 }
  0xe0   :  { %v107_v17 = vadd.s32 1, %v543_v13 }
  0xe1   :  { %vm212_vm1 = vcmp.gt.s32.totalorder %v211_v14, 0 }
  0xe2   :  { %v213_v18 = vsel %vm212_vm1, %v211_v14, 0  ;;  %vm108_vm2 = vcmp.gt.s32.totalorder %v107_v17, 0  ;;  %vm99_vm1 = vcmp.lt.s32.totalorder %v655_v6, 0 }
  0xe3   :  { %v214_v19 = vshrl.u32 %v213_v18, 5  ;;  %v215_v20 = vand.u32 31, %v213_v18  ;;  %v109_v21 = vsel %vm108_vm2, %v107_v17, 0  ;;  %v145_v17 = vshll.u32 %v105_v23, 8 }
  0xe4   :  { %v668_v27 = vshrl.u32 %v109_v21, 5  ;;  %v111_v28 = vand.u32 31, %v109_v21  ;;  %vm98_vm2 = vcmp.le.f32.partialorder %v97_v10, 0.7853982 }
  0xe5   :  { %v216_v24 = vsub.s32 32, %v215_v20  ;;  %v218_v26 = vshll.u32 %v617_v25, %v215_v20  ;;  %v221_v30 = vshll.u32 %v618_v29, %v215_v20  ;;  %v224_v32 = vshll.u32 %v619_v31, %v215_v20 }
  0xe6   :  { %v227_v34 = vshll.u32 %v620_v33, %v215_v20  ;;  %v230_v36 = vshll.u32 %v621_v35, %v215_v20  ;;  %vm233_vm3 = vcmp.lt.s32.totalorder %v214_v19, 1  ;;  %vm234_vm4 = vcmp.lt.s32.totalorder %v214_v19, 2 }
  0xe7   :  { %v219_v37 = vshrl.u32 %v618_v29, %v216_v24  ;;  %v222_v38 = vshrl.u32 %v619_v31, %v216_v24  ;;  %v225_v39 = vshrl.u32 %v620_v33, %v216_v24  ;;  %v217_v40 = vshrl.u32 %v617_v25, %v216_v24 }
  0xe8   :  { %v228_v41 = vshrl.u32 %v621_v35, %v216_v24  ;;  %v231_v43 = vshrl.u32 %v622_v42, %v216_v24  ;;  %v112_v47 = vsub.s32 32, %v111_v28  ;;  %vm235_vm5 = vcmp.lt.s32.totalorder %v214_v19, 3 }
  0xe9   :  { %v220_v44 = vor.u32 %v219_v37, %v218_v26  ;;  %v223_v45 = vor.u32 %v222_v38, %v221_v30  ;;  %v226_v46 = vor.u32 %v225_v39, %v224_v32  ;;  %vm236_vm6 = vcmp.lt.s32.totalorder %v214_v19, 4 }
  0xea   :  { %v229_v48 = vor.u32 %v228_v41, %v227_v34  ;;  %v232_v49 = vor.u32 %v231_v43, %v230_v36  ;;  %v114_v57 = vshll.u32 %v617_v25, %v111_v28  ;;  %v115_v60 = vshrl.u32 %v618_v29, %v112_v47 }
  0xeb   :  { %v237_v50 = vsel %vm233_vm3, %v217_v40, %v220_v44  ;;  %v238_v51 = vsel %vm236_vm6, %v226_v46, 2102212464  ;;  %v241_v52 = vsel %vm233_vm3, %v220_v44, %v223_v45  ;;  %v245_v53 = vsel %vm233_vm3, %v223_v45, %v226_v46 }
  0xec   :  { %v239_v54 = vsel %vm235_vm5, %v223_v45, %v238_v51  ;;  %v242_v55 = vsel %vm236_vm6, %v229_v48, 920167782  ;;  %v246_v56 = vsel %vm236_vm6, %v232_v49, 1326507024  ;;  %v117_v61 = vshll.u32 %v618_v29, %v111_v28 }
  0xed   :  { %v243_v58 = vsel %vm235_vm5, %v226_v46, %v242_v55  ;;  %v247_v59 = vsel %vm235_vm5, %v229_v48, %v246_v56  ;;  %v240_v62 = vsel %vm234_vm4, %v237_v50, %v239_v54  ;;  %v118_v1 = vshrl.u32 %v619_v31, %v112_v47 }
  0xee   :  { %v244_v63 = vsel %vm234_vm4, %v241_v52, %v243_v58  ;;  %v248_v0 = vsel %vm234_vm4, %v245_v53, %v247_v59  ;;  %v116_v9 = vor.u32 %v115_v60, %v114_v57  ;;  %v120_v12 = vshll.u32 %v619_v31, %v111_v28 }
  0xef   :  { %v677_v2 = vmul.u32.u64.low %v665_v22, %v248_v0  ;;  %v678_v5 = vmul.u32.u64.high %v665_v22, %v248_v0, %v677_v2  ;;  %v681_v7 = vmul.u32.u64.low %v665_v22, %v244_v63  ;;  %v682_v8 = vmul.u32.u64.high %v665_v22, %v244_v63, %v681_v7 }
  0xf0   :  { %v119_v11 = vor.u32 %v118_v1, %v117_v61  ;;  %v121_v13 = vshrl.u32 %v620_v33, %v112_v47  ;;  %v123_v14 = vshll.u32 %v620_v33, %v111_v28  ;;  %v124_v15 = vshrl.u32 %v621_v35, %v112_v47 }
  0xf1   :  { %v127_v16 = vshrl.u32 %v622_v42, %v112_v47  ;;  %v256_v18 = vmul.u32 %v665_v22, %v240_v62  ;;  %v113_v19 = vshrl.u32 %v617_v25, %v112_v47  ;;  %v126_v21 = vshll.u32 %v621_v35, %v111_v28 }
  0xf2   :  { %v122_v20 = vor.u32 %v121_v13, %v120_v12  ;;  %vm258_vm7 = vc.u32 %v678_v5, %v681_v7  ;;  %v259_v24 = vadd.s32 1, %v682_v8  ;;  %v125_v26 = vor.u32 %v124_v15, %v123_v14 }
  0xf3   :  { %vm129_vm8 = vcmp.lt.s32.totalorder %v668_v27, 1  ;;  %v128_v29 = vor.u32 %v127_v16, %v126_v21  ;;  %vm131_vm9 = vcmp.lt.s32.totalorder %v668_v27, 3  ;;  %vm132_vm10 = vcmp.lt.s32.totalorder %v668_v27, 4 }
  0xf4   :  { %v137_v30 = vsel %vm129_vm8, %v116_v9, %v119_v11  ;;  %v260_v23 = vsel %vm258_vm7, %v259_v24, %v682_v8  ;;  %v134_v31 = vsel %vm132_vm10, %v122_v20, 2102212464  ;;  %v138_v22 = vsel %vm132_vm10, %v125_v26, 920167782 }
  0xf5   :  { %v141_v25 = vsel %vm129_vm8, %v119_v11, %v122_v20  ;;  %v261_v32 = vadd.s32 %v260_v23, %v256_v18  ;;  %vm130_vm11 = vcmp.lt.s32.totalorder %v668_v27, 2  ;;  %v139_v28 = vsel %vm131_vm9, %v122_v20, %v138_v22 }
  0xf6   :  { %v142_v33 = vsel %vm132_vm10, %v128_v29, 1326507024  ;;  %v133_v34 = vsel %vm129_vm8, %v113_v19, %v116_v9  ;;  %v135_v35 = vsel %vm131_vm9, %v119_v11, %v134_v31  ;;  %v140_v36 = vsel %vm130_vm11, %v137_v30, %v139_v28 }
  0xf7   :  { %v143_v37 = vsel %vm131_vm9, %v125_v26, %v142_v33  ;;  %v262_v38 = vadd.s32 536870912, %v261_v32  ;;  %v692_v40 = vmul.u32.u64.low %v145_v17, %v140_v36  ;;  %v693_v41 = vmul.u32.u64.high %v145_v17, %v140_v36, %v692_v40 }
  0xf8   :  { %v144_v39 = vsel %vm130_vm11, %v141_v25, %v143_v37  ;;  %v136_v45 = vsel %vm130_vm11, %v133_v34, %v135_v35  ;;  %v257_v61 = vadd.s32 %v681_v7, %v678_v5  ;;  %vm293_vm6 = vweird.f32 %v651_v3 }
  0xf9   :  { %v695_v42 = vmul.u32.u64.low %v145_v17, %v144_v39  ;;  %v696_v43 = vmul.u32.u64.high %v145_v17, %v144_v39, %v695_v42  ;;  %v263_v44 = vshrl.u32 %v262_v38, 30  ;;  %v155_v47 = vadd.s32 1, %v693_v41 }
  0xfa   :  { %v152_v27 = vmul.u32 %v145_v17, %v136_v45 }
  0xfb   :  { %v264_v46 = vshll.u32 %v263_v44, 30  ;;  %vm154_vm12 = vc.u32 %v696_v43, %v692_v40  ;;  %v153_v18 = vadd.s32 %v692_v40, %v696_v43  ;;  %v287_v7 = vsub.s32 4, %v263_v44 }
  0xfc   :  { %v156_v49 = vsel %vm154_vm12, %v155_v47, %v693_v41 }
  0xfd   :  { %v265_v48 = vsub.s32 %v261_v32, %v264_v46  ;;  %v157_v50 = vadd.s32 %v156_v49, %v152_v27  ;;  %v288_v22 = vsel %vm203_vm15, %v287_v7, %v263_v44 }
  0xfe   :  { %v290_v34 = vsel %vm202_vm0, 0, %v288_v22 }
  0xff   :  { %v267_v51 = vsub.s32 0, %v265_v48  ;;  %v158_v52 = vadd.s32 536870912, %v157_v50  ;;  %v294_v37 = vadd.s32 3, %v290_v34 }
 0x101   :  { %v548_v53 = vmin.u32 %v267_v51, %v265_v48  ;;  %v159_v54 = vshrl.u32 %v158_v52, 30  ;;  %v295_v41 = vand.u32 3, %v294_v37  ;;  %v501_v51 = vand.u32 3, %v290_v34 }
 0x103   :  { %v269_v55 = vclz %v548_v53  ;;  %v160_v56 = vshll.u32 %v159_v54, 30  ;;  %v183_v36 = vsub.s32 4, %v159_v54  ;;  %vm300_vm3 = vcmp.eq.s32.totalorder %v295_v41, 2 }
 0x104   :  { %vm297_vm4 = vcmp.eq.s32.totalorder %v295_v41, 0  ;;  %vm296_vm5 = vcmp.lt.s32.totalorder %v295_v41, 2  ;;  %vm503_vm8 = vcmp.eq.s32.totalorder %v501_v51, 0  ;;  %vm506_vm9 = vcmp.eq.s32.totalorder %v501_v51, 2 }
 0x105   :  { %v549_v57 = vadd.s32 4294967294, %v269_v55  ;;  %v161_v58 = vsub.s32 %v157_v50, %v160_v56  ;;  %v184_v39 = vsel %vm99_vm1, %v183_v36, %v159_v54 }
 0x106   :  { %v186_v43 = vsel %vm98_vm2, 0, %v184_v39 }
 0x107   :  { %vm550_vm13 = vcmp.lt.s32.totalorder %v549_v57, 0  ;;  %v163_v60 = vsub.s32 0, %v161_v58  ;;  %v190_v47 = vadd.s32 3, %v186_v43  ;;  %v398_v49 = vand.u32 3, %v186_v43 }
 0x108   :  { %v272_v59 = vsel %vm550_vm13, 0, %v549_v57 }
 0x109   :  { %v273_v62 = vsub.s32 32, %v272_v59  ;;  %v277_v63 = vsub.s32 4294967266, %v272_v59  ;;  %v544_v0 = vmin.u32 %v163_v60, %v161_v58  ;;  %v274_v1 = vshll.u32 %v265_v48, %v272_v59 }
 0x10a   :  { %v191_v52 = vand.u32 3, %v190_v47  ;;  %vm399_vm7 = vcmp.lt.s32.totalorder %v398_v49, 2  ;;  %vm400_vm11 = vcmp.eq.s32.totalorder %v398_v49, 0  ;;  %vm403_vm12 = vcmp.eq.s32.totalorder %v398_v49, 2 }
 0x10b   :  { %v275_v2 = vshrl.u32 %v257_v61, %v273_v62  ;;  %v278_v8 = vadd.s32 127, %v277_v63  ;;  %v165_v9 = vclz %v544_v0 }
 0x10c   :  { %vm196_vm10 = vcmp.eq.s32.totalorder %v191_v52, 2  ;;  %vm192_vm13 = vcmp.lt.s32.totalorder %v191_v52, 2 }
 0x10d   :  { %v276_v11 = vor.u32 %v275_v2, %v274_v1  ;;  %v279_v12 = vshll.u32 %v278_v8, 23  ;;  %v545_v13 = vadd.s32 4294967294, %v165_v9 }
 0x10f   :  { %v280_v14 = vor.u32 4788187, %v279_v12  ;;  %vm546_vm14 = vcmp.lt.s32.totalorder %v545_v13, 0  ;;  %v283_v16 = vcvt.s32.f32 %v276_v11 }
 0x110   :  { %v168_v17 = vsel %vm546_vm14, 0, %v545_v13  ;;  %vm193_vm14 = vcmp.eq.s32.totalorder %v191_v52, 0 }
 0x111   :  { %v281_v15 = vand.u32 2147483647, %v280_v14  ;;  %v169_v19 = vsub.s32 32, %v168_v17  ;;  %v173_v20 = vsub.s32 4294967266, %v168_v17  ;;  %v170_v21 = vshll.u32 %v161_v58, %v168_v17 }
 0x113   :  { %v284_v5 = vmul.f32 %v283_v16, %v281_v15  ;;  %v171_v24 = vshrl.u32 %v153_v18, %v169_v19  ;;  %v174_v26 = vadd.s32 127, %v173_v20 }
 0x115   :  { %v285_v29 = vxor.u32 2147483648, %v284_v5  ;;  %v172_v30 = vor.u32 %v171_v24, %v170_v21  ;;  %v175_v23 = vshll.u32 %v174_v26, 23 }
 0x117   :  { %v286_v31 = vsel %vm203_vm15, %v285_v29, %v284_v5  ;;  %v176_v32 = vor.u32 4788187, %v175_v23  ;;  %v179_v33 = vcvt.s32.f32 %v172_v30  ;;  %vm189_vm15 = vweird.f32 %v655_v6 }
 0x118   :  { %v289_v25 = vsel %vm202_vm0, %v651_v3, %v286_v31  ;;  %vm502_vm0 = vcmp.lt.s32.totalorder %v501_v51, 2 }
 0x119   :  { %585 = vcosq.f32 %v289_v25  ;;  %v177_v28 = vand.u32 2147483647, %v176_v32 }
 0x11a   :  { %587 = vsinq.f32 %v289_v25 }
 0x11b   :  { %v180_v35 = vmul.f32 %v179_v33, %v177_v28 }
 0x11d   :  { %v181_v38 = vxor.u32 2147483648, %v180_v35 }
 0x11f   :  { %v182_v4 = vsel %vm99_vm1, %v181_v38, %v180_v35  ;;  %vm519_vm1 = vcmask 261120  }
 0x120   :  { %v185_v40 = vsel %vm98_vm2, %v655_v6, %v182_v4  ;;  %vm522_vm2 = vcmask 523264  }
 0x121   :  { %589 = vcosq.f32 %v185_v40 }
 0x122   :  { %591 = vsinq.f32 %v185_v40 }
 0x123   :  { %v586_v42 = vpop.eup %585 }
 0x124   :  { %v588_v44 = vpop.eup %587  ;;  %v301_v45 = vxor.u32 2147483648, %v586_v42 }
 0x125   :  { %v298_v46 = vxor.u32 2147483648, %v588_v44 }
 0x126   :  { %v302_v27 = vsel %vm300_vm3, %v301_v45, %v588_v44  ;;  %v508_v62 = vsel %vm506_vm9, %v301_v45, %v588_v44 }
 0x127   :  { %v299_v48 = vsel %vm297_vm4, %v586_v42, %v298_v46  ;;  %v505_v61 = vsel %vm503_vm8, %v586_v42, %v298_v46 }
 0x128   :  { %v303_v10 = vsel %vm296_vm5, %v299_v48, %v302_v27  ;;  %v509_v8 = vsel %vm502_vm0, %v505_v61, %v508_v62 }
 0x129   :  { %v304_v50 = vsel %vm293_vm6, nan, %v303_v10  ;;  %v510_v9 = vsel %vm293_vm6, nan, %v509_v8 }
 0x12b   :  { %v590_v53 = vpop.eup %589 }
 0x12c   :  { %v592_v54 = vpop.eup %591  ;;  %v197_v55 = vxor.u32 2147483648, %v590_v53 }
 0x12d   :  { %v194_v56 = vxor.u32 2147483648, %v592_v54 }
 0x12e   :  { %v405_v57 = vsel %vm403_vm12, %v197_v55, %v592_v54  ;;  %v198_v58 = vsel %vm196_vm10, %v197_v55, %v592_v54 }
 0x12f   :  { %v402_v59 = vsel %vm400_vm11, %v590_v53, %v194_v56  ;;  %v195_v60 = vsel %vm193_vm14, %v590_v53, %v194_v56 }
 0x130   :  { %v406_v63 = vsel %vm399_vm7, %v402_v59, %v405_v57  ;;  %v199_v0 = vsel %vm192_vm13, %v195_v60, %v198_v58 }
 0x131   :  { %v407_v1 = vsel %vm189_vm15, nan, %v406_v63  ;;  %v200_v2 = vsel %vm189_vm15, nan, %v199_v0 }
 0x132   :  { %513 = vrot.lane.b32.xlu0 %v407_v1, %s623_s0 }
 0x136   :  { %515 = vrot.lane.b32.xlu0 %v510_v9, %s623_s0 }
 0x1a4   :  { %v514_v11 = vpop.permute.xlu0 %513 }
 0x1a5   :  { %v520_v12 = vsel %vm519_vm1, %v200_v2, %v514_v11 }
 0x1a6   :  { %523 = vst.msk [vmem:[#allocation2] sm:$0xff] %vm522_vm2, %v520_v12 }
 0x1a8   :  { %v516_v6 = vpop.permute.xlu0 %515 }
 0x1a9   :  { %v521_v13 = vsel %vm519_vm1, %v304_v50, %v516_v6 }
 0x1aa   :  { %524 = vst.msk [vmem:[#allocation2 + $0x8] sm:$0xff] %vm522_vm2, %v521_v13 }
 0x1ab   :  { %604 = shalt.err (!%p601_p4)
}
 0x1ac   :  { %s605_s19 = scalar_lea.hbm %s732_s2, 256 }
 0x1ad   :  { %p606_p5 = scmp.ne.s32.totalorder %s732_s2, %s605_s19  ;;  %p609_p6 = scmp.lt.u32.totalorder %s605_s19, %s732_s2 }
 0x1af   :  { %p611_p7 = pnand %p609_p6, %p606_p5 }
 0x1b1   :  { %614 = shalt.err (!%p611_p7)
}
 0x1b2   :  { %s625_s24 = smov 128   ;;  %s626_s25 = smov 8  }
 0x1b3   :  { %536 = dma.vmem_to_hbm [thread:$0]  %s531_s15, 256, %s732_s2, [#allocation3], %s625_s24, %s625_s24, %s626_s25  }
 0x1b4   :  { %615 = dma.done.wait [#allocation3], 256  }
 0x1b5   :  { %616 = vsyncadd [#allocation3], 4294967040 }
 0x1b6   :  { %540 = vsyncpa [#allocation3], 1 }

</bundles_post_ra>
